<compile_context>
chip_gen: v6e
topology: v6e:2x2x1
jax: 0.10.0
libtpu: 0.0.40
codegen_flags: <defaults>
</compile_context>

<pallas_src>
import math
import functools

import jax
import jax.numpy as jnp
from jax.experimental import pallas as pl
from jax.experimental.pallas import tpu as pltpu


# ---------------------------------------------------------------------------
# Setup glue: the sinusoidal PE table, identical to the PyTorch buffer `pe`.
# ---------------------------------------------------------------------------
def make_pe_table(max_len: int, d_model: int) -> jnp.ndarray:
    position = jnp.arange(max_len, dtype=jnp.float32)[:, None]              # (max_len, 1)
    div_term = jnp.exp(jnp.arange(0, d_model, 2, dtype=jnp.float32)
                       * (-math.log(10000.0) / d_model))                    # (d_model//2,)
    angles = position * div_term                                            # (max_len, d_model//2)
    pe = jnp.zeros((max_len, d_model), dtype=jnp.float32)
    pe = pe.at[:, 0::2].set(jnp.sin(angles))
    pe = pe.at[:, 1::2].set(jnp.cos(angles))
    return pe


# ---------------------------------------------------------------------------
# Kernel: one (tile_rows, D) lane-dense slab per grid step.
#   y = x * sqrt(d_model) + pe            (+ optional precomputed dropout mask)
# ---------------------------------------------------------------------------
def _fused_scale_pe_dropout_kernel(*refs, scale: float, apply_mask: bool):
    if apply_mask:
        x_ref, pe_ref, m_ref, o_ref = refs
    else:
        x_ref, pe_ref, o_ref = refs

    y = x_ref[...] * scale + pe_ref[...]        # compute in the input dtype (bf16-native ok)
    if apply_mask:
        y = y * m_ref[...]                      # mask already carries the 1/(1-p) scaling
    o_ref[...] = y.astype(o_ref.dtype)


def _round_up(v: int, m: int) -> int:
    return ((v + m - 1) // m) * m


# ---------------------------------------------------------------------------
# Wrapper: PositionalEncoding.forward fused with the `* sqrt(d_model)` scale.
#   x:        (seq_len, batch, d_model)   -- same (S, B, E) convention as PyTorch
#   pe_table: (max_len, d_model), max_len >= seq_len
# ---------------------------------------------------------------------------
def scaled_positional_encoding(x: jnp.ndarray,
                               pe_table: jnp.ndarray,
                               *,
                               p_drop: float = 0.1,
                               training: bool = False,
                               rng_key=None,
                               apply_embedding_scale: bool = True,
                               max_tile_rows: int = 512) -> jnp.ndarray:
    S, B, D = x.shape
    assert pe_table.shape[0] >= S and pe_table.shape[1] == D

    dtype = x.dtype
    itemsize = jnp.dtype(dtype).itemsize
    scale = float(math.sqrt(D)) if apply_embedding_scale else 1.0

    apply_mask = bool(training) and p_drop > 0.0
    if apply_mask and p_drop >= 1.0:            # degenerate case: everything dropped
        return jnp.zeros_like(x)

    # ---- flatten to token rows (free, row-major): row r <-> (seq = r // B, batch = r % B)
    rows = S * B
    x_rows = x.reshape(rows, D)
    pe_rows = jnp.repeat(pe_table[:S].astype(dtype), B, axis=0)             # (rows, D)

    mask_rows = None
    if apply_mask:
        if rng_key is None:
            rng_key = jax.random.PRNGKey(0)
        keep = jax.random.bernoulli(rng_key, 1.0 - p_drop, (rows, D))
        mask_rows = keep.astype(dtype) * (1.0 / (1.0 - p_drop))             # inverted dropout

    # ---- tile sizing: big row tiles, capped at ~3 MiB per pipeline buffer
    per_buffer_budget = 3 * 1024 * 1024
    cap = max(8, (per_buffer_budget // max(1, D * itemsize)) // 8 * 8)
    row_tile_limit = max(8, min(int(max_tile_rows), cap))

    rows8 = _round_up(rows, 8)
    if rows8 <= row_tile_limit:
        num_tiles, tile_rows = 1, rows8
    else:
        num_tiles = -(-rows8 // row_tile_limit)
        tile_rows = _round_up(-(-rows8 // num_tiles), 8)
    rows_padded = num_tiles * tile_rows

    pad = rows_padded - rows
    if pad:
        x_rows = jnp.pad(x_rows, ((0, pad), (0, 0)))
        pe_rows = jnp.pad(pe_rows, ((0, pad), (0, 0)))
        if apply_mask:
            mask_rows = jnp.pad(mask_rows, ((0, pad), (0, 0)))

    row_spec = pl.BlockSpec((tile_rows, D), lambda i: (i, 0))
    in_specs = [row_spec, row_spec] + ([row_spec] if apply_mask else [])
    operands = [x_rows, pe_rows] + ([mask_rows] if apply_mask else [])

    kernel = functools.partial(_fused_scale_pe_dropout_kernel,
                               scale=scale, apply_mask=apply_mask)

    out_rows = pl.pallas_call(
        kernel,
        out_shape=jax.ShapeDtypeStruct((rows_padded, D), dtype),
        grid=(num_tiles,),
        in_specs=in_specs,
        out_specs=row_spec,
        compiler_params=pltpu.CompilerParams(
            dimension_semantics=("parallel",),        # tiles are independent -> v7x 2-TC split
            vmem_limit_bytes=48 * 1024 * 1024,        # > v5e's 16 MiB default, < v7x's 64 MiB
        ),
    )(*operands)

    return out_rows[:rows].reshape(S, B, D)


if __name__ == "__main__":
    # Small shapes consistent with the module's (seq_len, batch, d_model) convention.
    # d_model = 128 keeps the output lane-dense.
    seq_len, batch, d_model = 16, 4, 128
    max_len = 64
    p_drop = 0.1

    key = jax.random.PRNGKey(0)
    k_x, k_drop = jax.random.split(key)
    # x stands in for `tok_emb(src)` (the gather itself is not part of this kernel).
    x = jax.random.normal(k_x, (seq_len, batch, d_model), dtype=jnp.float32)
    pe_table = make_pe_table(max_len, d_model)

    scale = math.sqrt(d_model)
    ref_eval = x * scale + pe_table[:seq_len][:, None, :]

    # --- eval mode (dropout is identity): single-tile path -------------------
    out_eval = scaled_positional_encoding(x, pe_table, p_drop=p_drop, training=False)
    out_eval = jax.block_until_ready(out_eval)
    assert out_eval.shape == x.shape
    assert jnp.allclose(out_eval, ref_eval, atol=1e-5, rtol=1e-5), "eval-mode mismatch"

    # --- same result when the grid actually has multiple tiles ---------------
    out_eval_tiled = scaled_positional_encoding(x, pe_table, p_drop=p_drop,
                                                training=False, max_tile_rows=16)
    out_eval_tiled = jax.block_until_ready(out_eval_tiled)
    assert jnp.allclose(out_eval_tiled, ref_eval, atol=1e-5, rtol=1e-5), "tiled-grid mismatch"

    # --- training mode (inverted dropout with a precomputed keep-mask) -------
    out_train = scaled_positional_encoding(x, pe_table, p_drop=p_drop,
                                           training=True, rng_key=k_drop)
    out_train = jax.block_until_ready(out_train)
    keep = jax.random.bernoulli(k_drop, 1.0 - p_drop, (seq_len * batch, d_model))
    mask = (keep.astype(x.dtype) * (1.0 / (1.0 - p_drop))).reshape(seq_len, batch, d_model)
    ref_train = ref_eval * mask
    assert jnp.allclose(out_train, ref_train, atol=1e-5, rtol=1e-5), "train-mode mismatch"

    print("KERNEL_OK")
</pallas_src>

<mosaic_0001>
module attributes {stable_mosaic.version = 11 : i64} {
  func.func @_fused_scale_pe_dropout_kernel(%arg0: i32, %arg1: memref<64x128xf32, #tpu.memory_space<vmem>>, %arg2: memref<64x128xf32, #tpu.memory_space<vmem>>, %arg3: memref<64x128xf32, #tpu.memory_space<vmem>>) attributes {dimension_semantics = [#tpu.dimension_semantics<parallel>], iteration_bounds = array<i64: 1>, scalar_prefetch = 0 : i64, scratch_operands = 0 : i64, tpu.core_type = #tpu.core_type<tc>, window_params = [{transform_indices = @transform_0, window_bounds = array<i64: 64, 128>}, {transform_indices = @transform_1, window_bounds = array<i64: 64, 128>}, {transform_indices = @transform_2, window_bounds = array<i64: 64, 128>}]} {
    %c0 = arith.constant 0 : index
    %c0_0 = arith.constant 0 : index
    %0 = vector.load %arg1[%c0, %c0_0] : memref<64x128xf32, #tpu.memory_space<vmem>>, vector<64x128xf32>
    %cst = arith.constant 11.3137083 : f32
    %1 = vector.broadcast %cst : f32 to vector<64x128xf32>
    %2 = arith.mulf %0, %1 : vector<64x128xf32>
    %c0_1 = arith.constant 0 : index
    %c0_2 = arith.constant 0 : index
    %3 = vector.load %arg2[%c0_1, %c0_2] : memref<64x128xf32, #tpu.memory_space<vmem>>, vector<64x128xf32>
    %4 = arith.addf %2, %3 : vector<64x128xf32>
    %c0_3 = arith.constant 0 : index
    %c0_4 = arith.constant 0 : index
    %5 = vector.load %arg3[%c0_3, %c0_4] : memref<64x128xf32, #tpu.memory_space<vmem>>, vector<64x128xf32>
    tpu.vector_store %arg3[%c0_3, %c0_4], %4 {strides = array<i32>} : memref<64x128xf32, #tpu.memory_space<vmem>>, vector<64x128xf32>,
    return
  }
  func.func @transform_0(%arg0: i32) -> (i32, i32) {
    %c0_i32 = arith.constant 0 : i32
    %c0_i32_0 = arith.constant 0 : i32
    return %arg0, %c0_i32 : i32, i32
  }
  func.func @transform_1(%arg0: i32) -> (i32, i32) {
    %c0_i32 = arith.constant 0 : i32
    %c0_i32_0 = arith.constant 0 : i32
    return %arg0, %c0_i32 : i32, i32
  }
  func.func @transform_2(%arg0: i32) -> (i32, i32) {
    %c0_i32 = arith.constant 0 : i32
    %c0_i32_0 = arith.constant 0 : i32
    return %arg0, %c0_i32 : i32, i32
  }
}

</mosaic_0001>

<bundles_post_ra>
// kernel: tpu_custom_call.1
= control target key start
LH: loop header
LB: loop body
LE: loop exit
PB: predicated region body
PF: predicated region fallthrough
CT: control target
= control target key end

     0   :  { %7 = vsyncpa [#allocation3], 0  ;;  %s207_s0 = inlined_call_operand.hbm [shape: f32[64,128], index: 0, kind: input, shape index: {}]   ;;  %s208_s1 = inlined_call_operand.hbm [shape: f32[64,128], index: 1, kind: input, shape index: {}]   ;;  %s209_s2 = inlined_call_operand.hbm [shape: f32[64,128], index: 2, kind: output, shape index: {}]  }
   0x1   :  { %8 = vsyncpa [#allocation6], 0 }
   0x2   :  { %9 = vsyncpa [#allocation4], 0  ;;  %s169_s9 = smov [#allocation2]  }
   0x3   :  { %s15_s10 = sshll.u32 %s169_s9, 4  ;;  %s16_s10 = int_to_ptr.vmem [resolvable:$true] %s15_s10 }
   0x4   :  { %s111_s11 = scalar_lea.vmem %s16_s10, 1024  ;;  %p116_p1 = scmp.lt.s32.totalorder %s16_s10, %s16_s10 }
   0x5   :  { %p112_p0 = scmp.ne.s32.totalorder %s16_s10, %s111_s11  ;;  %p117_p2 = scmp.lt.s32.totalorder %s111_s11, %s111_s11 }
   0x7   :  { %p118_p3 = por %p117_p2, %p116_p1 }
   0x9   :  { %p119_p4 = pnand %p118_p3, %p112_p0 }
   0xb   :  { %122 = shalt.err (!%p119_p4)
}
   0xc   :  { %s170_s12 = smov 128   ;;  %s171_s13 = smov 8  }
   0xd   :  { %21 = dma.hbm_to_vmem [thread:$0]  %s207_s0, 1024, %s16_s10, [#allocation3], %s170_s12, %s170_s12, %s171_s13  }
   0xe   :  { %s172_s16 = smov [#allocation5]  }
   0xf   :  { %s27_s17 = sshll.u32 %s172_s16, 4  ;;  %s28_s17 = int_to_ptr.vmem [resolvable:$true] %s27_s17 }
  0x10   :  { %s131_s18 = scalar_lea.vmem %s28_s17, 1024  ;;  %p136_p6 = scmp.lt.s32.totalorder %s28_s17, %s28_s17 }
  0x11   :  { %p132_p5 = scmp.ne.s32.totalorder %s28_s17, %s131_s18  ;;  %p137_p7 = scmp.lt.s32.totalorder %s131_s18, %s131_s18 }
  0x13   :  { %p138_p8 = por %p137_p7, %p136_p6 }
  0x15   :  { %p139_p9 = pnand %p138_p8, %p132_p5 }
  0x17   :  { %142 = shalt.err (!%p139_p9)
}
  0x18   :  { %33 = dma.hbm_to_vmem [thread:$0]  %s208_s1, 1024, %s28_s17, [#allocation6], %s170_s12, %s170_s12, %s171_s13  }
  0x19   :  { %163 = dma.done.wait [#allocation3], 1024  }
  0x1a   :  { %164 = vsyncadd [#allocation3], 4294966272 }
  0x1b   :  { %165 = dma.done.wait [#allocation6], 1024  }
  0x1c   :  { %166 = vsyncadd [#allocation6], 4294966272  ;;  %v40_v0 = vld [vmem:[#allocation2] sm:$0xff]  ;;  %v41_v2 = vld [vmem:[#allocation2 + $0x8] sm:$0xff]  ;;  %s173_s0 = smov [#allocation7]  }
  0x1d   :  { %v56_v1 = vld [vmem:[#allocation5] sm:$0xff]  ;;  %v48_v3 = vmul.f32 11.313708, %v40_v0  ;;  %v49_v4 = vmul.f32 11.313708, %v41_v2  ;;  %v57_v5 = vld [vmem:[#allocation5 + $0x8] sm:$0xff] }
  0x1e   :  { %v42_v6 = vld [vmem:[#allocation2 + $0x10] sm:$0xff]  ;;  %v43_v9 = vld [vmem:[#allocation2 + $0x18] sm:$0xff]  ;;  %v44_v14 = vld [vmem:[#allocation2 + $0x20] sm:$0xff]  ;;  %s85_s1 = sshll.u32 %s173_s0, 4  ;;  %s86_s1 = int_to_ptr.vmem [resolvable:$true] %s85_s1 }
  0x1f   :  { %v50_v7 = vmul.f32 11.313708, %v42_v6  ;;  %v58_v8 = vld [vmem:[#allocation5 + $0x10] sm:$0xff]  ;;  %v59_v10 = vld [vmem:[#allocation5 + $0x18] sm:$0xff]  ;;  %v64_v11 = vadd.f32 %v56_v1, %v48_v3  ;;  %v65_v12 = vadd.f32 %v57_v5, %v49_v4  ;;  %v51_v13 = vmul.f32 11.313708, %v43_v9  ;;  %p148_p11 = scmp.lt.s32.totalorder %s86_s1, %s86_s1 }
  0x20   :  { %v60_v15 = vld [vmem:[#allocation5 + $0x20] sm:$0xff]  ;;  %v45_v16 = vld [vmem:[#allocation2 + $0x28] sm:$0xff]  ;;  %v52_v18 = vmul.f32 11.313708, %v44_v14  ;;  %v46_v21 = vld [vmem:[#allocation2 + $0x30] sm:$0xff]  ;;  %s143_s21 = scalar_lea.vmem %s86_s1, 1024 }
  0x21   :  { %v66_v17 = vadd.f32 %v58_v8, %v50_v7  ;;  %v53_v19 = vmul.f32 11.313708, %v45_v16  ;;  %v61_v20 = vld [vmem:[#allocation5 + $0x28] sm:$0xff]  ;;  %72 = vst [vmem:[#allocation7] sm:$0xff] %v64_v11  ;;  %73 = vst [vmem:[#allocation7 + $0x8] sm:$0xff] %v65_v12  ;;  %v67_v22 = vadd.f32 %v59_v10, %v51_v13  ;;  %v62_v24 = vld [vmem:[#allocation5 + $0x30] sm:$0xff]  ;;  %p144_p10 = scmp.ne.s32.totalorder %s86_s1, %s143_s21  ;;  %p149_p12 = scmp.lt.s32.totalorder %s143_s21, %s143_s21 }
  0x22   :  { %v54_v23 = vmul.f32 11.313708, %v46_v21  ;;  %v47_v25 = vld [vmem:[#allocation2 + $0x38] sm:$0xff]  ;;  %v68_v27 = vadd.f32 %v60_v15, %v52_v18 }
  0x23   :  { %v63_v26 = vld [vmem:[#allocation5 + $0x38] sm:$0xff]  ;;  %74 = vst [vmem:[#allocation7 + $0x10] sm:$0xff] %v66_v17  ;;  %v69_v28 = vadd.f32 %v61_v20, %v53_v19  ;;  %v55_v29 = vmul.f32 11.313708, %v47_v25  ;;  %75 = vst [vmem:[#allocation7 + $0x18] sm:$0xff] %v67_v22  ;;  %p150_p13 = por %p149_p12, %p148_p11 }
  0x24   :  { %v70_v30 = vadd.f32 %v62_v24, %v54_v23  ;;  %76 = vst [vmem:[#allocation7 + $0x20] sm:$0xff] %v68_v27 }
  0x25   :  { %77 = vst [vmem:[#allocation7 + $0x28] sm:$0xff] %v69_v28  ;;  %v71_v31 = vadd.f32 %v63_v26, %v55_v29  ;;  %p151_p0 = pnand %p150_p13, %p144_p10 }
  0x26   :  { %78 = vst [vmem:[#allocation7 + $0x30] sm:$0xff] %v70_v30 }
  0x27   :  { %79 = vst [vmem:[#allocation7 + $0x38] sm:$0xff] %v71_v31 }
  0x28   :  { %154 = shalt.err (!%p151_p0)
}
  0x29   :  { %91 = dma.vmem_to_hbm [thread:$0]  %s86_s1, 1024, %s209_s2, [#allocation4], %s170_s12, %s170_s12, %s171_s13  }
  0x2a   :  { %167 = dma.done.wait [#allocation4], 1024  }
  0x2b   :  { %168 = vsyncadd [#allocation4], 4294966272 }
  0x2c   :  { %95 = vsyncpa [#allocation3], 1 }
  0x2d   :  { %96 = vsyncpa [#allocation6], 1 }
  0x2e   :  { %97 = vsyncpa [#allocation4], 1 }

</bundles_post_ra>
